<compile_context>
chip_gen: v5e
topology: v5e:2x2
jax: 0.10.0
libtpu: 0.0.40
codegen_flags: <defaults>
</compile_context>

<pallas_src>
import functools
import numpy as np
import jax
import jax.numpy as jnp
from jax.experimental import pallas as pl
from jax.experimental.pallas import tpu as pltpu


def _round_up(x, m):
    return ((x + m - 1) // m) * m


def _pick_tile(dim_pad, cap):
    """Largest multiple of 128 that divides dim_pad (itself a multiple of 128), <= cap."""
    t = min(_round_up(cap, 128), dim_pad)
    t = (t // 128) * 128
    while dim_pad % t != 0:
        t -= 128
    return t


def _pick_tm(batch, cap=256):
    """Split the batch into near-equal M tiles (16-aligned for bf16 sublane packing)."""
    num_m = -(-batch // cap)
    return _round_up(-(-batch // num_m), 16)


def _bio_linear_kernel(x_ref, w_ref, b_ref, o_ref, acc_ref):
    k = pl.program_id(2)

    @pl.when(k == 0)
    def _():
        # Fold bias into the accumulator init (saves a (tm,tn) add in the epilogue).
        acc_ref[...] = jnp.broadcast_to(b_ref[...], acc_ref.shape)

    # x tile: (tm, tk) bf16; w tile: (tk, tn) bf16 -- native MXU layout, no transpose.
    acc_ref[...] += jnp.dot(x_ref[...], w_ref[...],
                            preferred_element_type=jnp.float32)

    @pl.when(k == pl.num_programs(2) - 1)
    def _():
        o_ref[...] = acc_ref[...].astype(o_ref.dtype)


@functools.partial(jax.jit, static_argnames=("out_dim", "tm", "tn", "tk"))
def _bio_linear_padded(x, w_kn, bias2, *, out_dim, tm, tn, tk):
    """y = x @ W^T + b with W pre-laid-out as (K_pad, N_pad) bf16 and b as (1, N_pad) f32."""
    B, in_dim = x.shape
    K_pad, N_pad = w_kn.shape
    M_pad = _round_up(B, tm)

    x = x.astype(jnp.bfloat16)
    if (M_pad, K_pad) != (B, in_dim):
        x = jnp.pad(x, ((0, M_pad - B), (0, K_pad - in_dim)))

    grid = (M_pad // tm, N_pad // tn, K_pad // tk)

    out = pl.pallas_call(
        _bio_linear_kernel,
        out_shape=jax.ShapeDtypeStruct((M_pad, N_pad), jnp.float32),
        grid_spec=pltpu.PrefetchScalarGridSpec(
            num_scalar_prefetch=0,
            grid=grid,
            in_specs=[
                pl.BlockSpec((tm, tk), lambda i, j, k: (i, k)),   # x  (bf16)
                pl.BlockSpec((tk, tn), lambda i, j, k: (k, j)),   # W^T (bf16, pre-padded)
                pl.BlockSpec((1, tn), lambda i, j, k: (0, j)),    # bias (f32)
            ],
            out_specs=pl.BlockSpec((tm, tn), lambda i, j, k: (i, j)),
            scratch_shapes=[pltpu.VMEM((tm, tn), jnp.float32)],
        ),
        compiler_params=pltpu.CompilerParams(
            dimension_semantics=("parallel", "parallel", "arbitrary"),
        ),
        cost_estimate=pl.CostEstimate(
            flops=2 * M_pad * K_pad * N_pad,
            transcendentals=0,
            bytes_accessed=2 * (M_pad * K_pad + K_pad * N_pad)
                           + 4 * (N_pad + M_pad * N_pad),
        ),
    )(x, w_kn, bias2)

    return out[:B, :out_dim]


class BioLinearParams:
    """JAX stand-in for the PyTorch BioLinear module (deterministic init, no checkpoint)."""

    def __init__(self, in_dim, out_dim, in_fold=1, out_fold=1, in_head=1, out_head=1,
                 key=jax.random.PRNGKey(0)):
        assert in_dim % in_fold == 0
        assert out_dim % out_fold == 0
        self.in_dim, self.out_dim = in_dim, out_dim
        self.in_fold, self.out_fold = in_fold, out_fold
        self.in_head, self.out_head = in_head, out_head

        kw, kb = jax.random.split(key)
        bound = 1.0 / np.sqrt(in_dim)   # nn.Linear default init range
        self.weight = jax.random.uniform(kw, (out_dim, in_dim), jnp.float32, -bound, bound)
        self.bias = jax.random.uniform(kb, (out_dim,), jnp.float32, -bound, bound)

        # --- one-time kernel-friendly layout (amortized across every forward call) ---
        K_pad = _round_up(in_dim, 128)
        N_pad = _round_up(out_dim, 128)
        w = self.weight
        if (N_pad, K_pad) != (out_dim, in_dim):
            w = jnp.pad(w, ((0, N_pad - out_dim), (0, K_pad - in_dim)))
        self._w_kn = jnp.asarray(w.T, dtype=jnp.bfloat16)       # (K_pad, N_pad) bf16
        b2 = self.bias.reshape(1, out_dim)
        if N_pad != out_dim:
            b2 = jnp.pad(b2, ((0, 0), (0, N_pad - out_dim)))
        self._bias2 = b2                                         # (1, N_pad) f32

        # Lane-dense tiles that exactly divide the 128-granular padded dims
        # (VMEM footprint at the caps: ~4.6 MiB double-buffered -> fits default scoped
        # VMEM on v5e/v6e/v7x alike).
        self._tn = _pick_tile(N_pad, 512)
        self._tk = _pick_tile(K_pad, 1024)
        # v7x has 2 TensorCores: if N would be a single block, split it so both get work.
        if N_pad // self._tn == 1 and N_pad >= 256:
            self._tn = _pick_tile(N_pad, N_pad // 2)

        # bio "coordinates" buffers (not used in forward, kept for parity with the spec)
        in_dim_fold = in_dim // in_fold
        out_dim_fold = out_dim // out_fold
        self.in_coordinates = jnp.asarray(
            list(np.linspace(1 / (2 * in_dim_fold), 1 - 1 / (2 * in_dim_fold),
                             num=in_dim_fold)) * in_fold, dtype=jnp.float32)
        self.out_coordinates = jnp.asarray(
            list(np.linspace(1 / (2 * out_dim_fold), 1 - 1 / (2 * out_dim_fold),
                             num=out_dim_fold)) * out_fold, dtype=jnp.float32)

    def __call__(self, x):
        tm = _pick_tm(x.shape[0])
        return _bio_linear_padded(x, self._w_kn, self._bias2,
                                  out_dim=self.out_dim, tm=tm,
                                  tn=self._tn, tk=self._tk)


if __name__ == "__main__":
    key = jax.random.PRNGKey(0)
    k_x, k_p = jax.random.split(key)

    # Small shapes consistent with the module's forward (plain linear on 2-D input).
    batch, in_dim, out_dim = 8, 32, 64
    x = jax.random.normal(k_x, (batch, in_dim), dtype=jnp.float32)

    mod = BioLinearParams(in_dim, out_dim, in_fold=2, out_fold=2, key=k_p)
    y = mod(x)
    jax.block_until_ready(y)

    # bf16 inputs + f32 accumulation -> relaxed tolerances vs the f32 reference.
    y_ref = x @ mod.weight.T + mod.bias
    np.testing.assert_allclose(np.asarray(y), np.asarray(y_ref), rtol=2e-2, atol=2e-2)

    # Larger, unaligned shapes: exercises 128-granular padding, multi-tile N,
    # K accumulation across grid steps, and the output slice-back.
    k_x2, k_p2 = jax.random.split(k_p)
    x2 = jax.random.normal(k_x2, (24, 700), dtype=jnp.float32)
    mod2 = BioLinearParams(700, 520, key=k_p2)
    y2 = mod2(x2)
    jax.block_until_ready(y2)
    y2_ref = x2 @ mod2.weight.T + mod2.bias
    np.testing.assert_allclose(np.asarray(y2), np.asarray(y2_ref), rtol=2e-2, atol=2e-2)

    print("KERNEL_OK")
</pallas_src>

<mosaic_0001>
module attributes {stable_mosaic.version = 11 : i64} {
  func.func @_bio_linear_kernel(%arg0: i32, %arg1: i32, %arg2: i32, %arg3: memref<16x128xbf16, #tpu.memory_space<vmem>>, %arg4: memref<128x128xbf16, #tpu.memory_space<vmem>>, %arg5: memref<1x128xf32, #tpu.memory_space<vmem>>, %arg6: memref<16x128xf32, #tpu.memory_space<vmem>>, %arg7: memref<16x128xf32, #tpu.memory_space<vmem>>) attributes {dimension_semantics = [#tpu.dimension_semantics<parallel>, #tpu.dimension_semantics<parallel>, #tpu.dimension_semantics<arbitrary>], iteration_bounds = array<i64: 1, 1, 1>, scalar_prefetch = 0 : i64, scratch_operands = 1 : i64, tpu.core_type = #tpu.core_type<tc>, window_params = [{transform_indices = @transform_0, window_bounds = array<i64: 16, 128>}, {transform_indices = @transform_1, window_bounds = array<i64: 128, 128>}, {transform_indices = @transform_2, window_bounds = array<i64: 1, 128>}, {transform_indices = @transform_3, window_bounds = array<i64: 16, 128>}]} {
    %c0_i32 = arith.constant 0 : i32
    %0 = arith.cmpi eq, %arg2, %c0_i32 : i32
    %1 = arith.extui %0 : i1 to i32
    %c0_i32_0 = arith.constant 0 : i32
    %2 = arith.cmpi ne, %1, %c0_i32_0 : i32
    scf.if %2 {
      %c0_10 = arith.constant 0 : index
      %c0_11 = arith.constant 0 : index
      %12 = vector.load %arg5[%c0_10, %c0_11] : memref<1x128xf32, #tpu.memory_space<vmem>>, vector<1x128xf32>
      %13 = vector.shape_cast %12 : vector<1x128xf32> to vector<1x128xf32>
      %14 = vector.broadcast %13 : vector<1x128xf32> to vector<16x128xf32>
      %c0_12 = arith.constant 0 : index
      %c0_13 = arith.constant 0 : index
      %15 = vector.load %arg7[%c0_12, %c0_13] : memref<16x128xf32, #tpu.memory_space<vmem>>, vector<16x128xf32>
      tpu.vector_store %arg7[%c0_12, %c0_13], %14 {strides = array<i32>} : memref<16x128xf32, #tpu.memory_space<vmem>>, vector<16x128xf32>,
    } else {
    }
    %c0 = arith.constant 0 : index
    %c0_1 = arith.constant 0 : index
    %3 = vector.load %arg7[%c0, %c0_1] : memref<16x128xf32, #tpu.memory_space<vmem>>, vector<16x128xf32>
    %c0_2 = arith.constant 0 : index
    %c0_3 = arith.constant 0 : index
    %4 = vector.load %arg3[%c0_2, %c0_3] : memref<16x128xbf16, #tpu.memory_space<vmem>>, vector<16x128xbf16>
    %c0_4 = arith.constant 0 : index
    %c0_5 = arith.constant 0 : index
    %5 = vector.load %arg4[%c0_4, %c0_5] : memref<128x128xbf16, #tpu.memory_space<vmem>>, vector<128x128xbf16>
    %cst = arith.constant dense<0.000000e+00> : vector<16x128xf32>
    %6 = tpu.matmul %4, %5, %cst {dimension_numbers = #tpu.dot_dimension_numbers<[1], [0], [0], [1], [0, 0, 1, 1], [], []>} : vector<16x128xbf16>, vector<128x128xbf16>, vector<16x128xf32> -> vector<16x128xf32>
    %7 = arith.addf %3, %6 : vector<16x128xf32>
    %c0_6 = arith.constant 0 : index
    %c0_7 = arith.constant 0 : index
    %8 = vector.load %arg7[%c0_6, %c0_7] : memref<16x128xf32, #tpu.memory_space<vmem>>, vector<16x128xf32>
    tpu.vector_store %arg7[%c0_6, %c0_7], %7 {strides = array<i32>} : memref<16x128xf32, #tpu.memory_space<vmem>>, vector<16x128xf32>,
    %c0_i32_8 = arith.constant 0 : i32
    %9 = arith.cmpi eq, %arg2, %c0_i32_8 : i32
    %10 = arith.extui %9 : i1 to i32
    %c0_i32_9 = arith.constant 0 : i32
    %11 = arith.cmpi ne, %10, %c0_i32_9 : i32
    scf.if %11 {
      %c0_10 = arith.constant 0 : index
      %c0_11 = arith.constant 0 : index
      %12 = vector.load %arg7[%c0_10, %c0_11] : memref<16x128xf32, #tpu.memory_space<vmem>>, vector<16x128xf32>
      %c0_12 = arith.constant 0 : index
      %c0_13 = arith.constant 0 : index
      %13 = vector.load %arg6[%c0_12, %c0_13] : memref<16x128xf32, #tpu.memory_space<vmem>>, vector<16x128xf32>
      tpu.vector_store %arg6[%c0_12, %c0_13], %12 {strides = array<i32>} : memref<16x128xf32, #tpu.memory_space<vmem>>, vector<16x128xf32>,
    } else {
    }
    return
  }
  func.func @transform_0(%arg0: i32, %arg1: i32, %arg2: i32) -> (i32, i32) {
    %c0_i32 = arith.constant 0 : i32
    return %arg0, %arg2 : i32, i32
  }
  func.func @transform_1(%arg0: i32, %arg1: i32, %arg2: i32) -> (i32, i32) {
    %c0_i32 = arith.constant 0 : i32
    return %arg2, %arg1 : i32, i32
  }
  func.func @transform_2(%arg0: i32, %arg1: i32, %arg2: i32) -> (i32, i32) {
    %c0_i32 = arith.constant 0 : i32
    %c0_i32_0 = arith.constant 0 : i32
    return %c0_i32, %arg1 : i32, i32
  }
  func.func @transform_3(%arg0: i32, %arg1: i32, %arg2: i32) -> (i32, i32) {
    %c0_i32 = arith.constant 0 : i32
    return %arg0, %arg1 : i32, i32
  }
}

</mosaic_0001>

<bundles_post_ra>
// kernel: _bio_linear_padded.1
= control target key start
LH: loop header
LB: loop body
LE: loop exit
PB: predicated region body
PF: predicated region fallthrough
CT: control target
= control target key end

     0   :  { %8 = vsyncpa [#allocation4], 0  ;;  %s219_s15 = smov [#allocation3]   ;;  %s220_s17 = smov 64   ;;  %s257_s0 = inlined_call_operand.vmem [shape: bf16[16,128], index: 0, kind: input, shape index: {}]   ;;  %s258_s1 = inlined_call_operand.hbm [shape: bf16[128,128], index: 1, kind: input, shape index: {}]   ;;  %s259_s2 = inlined_call_operand.vmem [shape: f32[1,128], index: 2, kind: input, shape index: {}]   ;;  %s260_s3 = inlined_call_operand.vmem [shape: f32[16,128], index: 3, kind: output, shape index: {}]  }
   0x1   :  { %s15_s14 = sshll.u32 %s258_s1, 4  ;;  %s17_s16 = sshll.u32 %s219_s15, 4  ;;  %s16_s14 = int_to_ptr.hbm [resolvable:$true] %s15_s14  ;;  %s18_s16 = int_to_ptr.vmem [resolvable:$true] %s17_s16 }
   0x2   :  { %s221_s18 = smov 4  }
   0x3   :  { %23 = dma.hbm_to_vmem [thread:$0]  %s16_s14, 1024, %s18_s16, [#allocation4], %s220_s17, %s220_s17, %s221_s18  }
   0x4   :  { %217 = dma.done.wait [#allocation4], 1024  }
   0x5   :  { %218 = vsyncadd [#allocation4], 4294966272  ;;  %v188_v0 = vld [vmem:[#allocation3 + $0x38] sm:$0xff]  ;;  %v187_v1 = vld [vmem:[#allocation3 + $0x30] sm:$0xff] }
   0x6   :  { %114 = vmatpush.bf16.msra.mxu0 %v188_v0  ;;  %v186_v2 = vld [vmem:[#allocation3 + $0x28] sm:$0xff]  ;;  %v185_v3 = vld [vmem:[#allocation3 + $0x20] sm:$0xff]  ;;  %v184_v4 = vld [vmem:[#allocation3 + $0x18] sm:$0xff] }
   0x7   :  { %v183_v5 = vld [vmem:[#allocation3 + $0x10] sm:$0xff]  ;;  %v182_v6 = vld [vmem:[#allocation3 + $0x8] sm:$0xff]  ;;  %v181_v7 = vld [vmem:[#allocation3] sm:$0xff] }
   0x8   :  { %v180_v8 = vld [vmem:[%s257_s0] sm:$0xff] }
   0x9   :  { %v192_v9 = vld [vmem:[%s259_s2] ss:$0 sm:$0xff] }
   0xa   :  { %115 = vmatpush.bf16.msra.mxu0 %v187_v1 }
   0xe   :  { %116 = vmatpush.bf16.msra.mxu0 %v186_v2 }
  0x12   :  { %117 = vmatpush.bf16.msra.mxu0 %v185_v3 }
  0x16   :  { %118 = vmatpush.bf16.msra.mxu0 %v184_v4 }
  0x1a   :  { %119 = vmatpush.bf16.msra.mxu0 %v183_v5 }
  0x1e   :  { %120 = vmatpush.bf16.msra.mxu0 %v182_v6 }
  0x22   :  { %121 = vmatpush.bf16.msra.mxu0 %v181_v7 }
  0x25   :  { %122 = vmatmul.bf16.vlgmr.msra.gmra.mxu0 %v180_v8 }
  0xa2   :  { %v123_v10 = vpop.f32.mrf.mxu0 }
  0xa3   :  { %v128_v11 = vadd.f32 %v192_v9, %v123_v10 }
  0xa5   :  { %137 = vst [vmem:[%s260_s3] sm:$0xff] %v128_v11 }
  0xaa   :  { %v125_v12 = vpop.f32.mrf.mxu0 }
  0xab   :  { %v129_v13 = vadd.f32 %v192_v9, %v125_v12 }
  0xad   :  { %138 = vst [vmem:[%s260_s3 + $0x8] sm:$0xff] %v129_v13 }
  0xae   :  { %143 = vsyncpa [#allocation4], 1 }

</bundles_post_ra>
